<compile_context>
chip_gen: v6e
topology: v6e:2x2x1
jax: 0.10.0
libtpu: 0.0.40
codegen_flags: <defaults>
</compile_context>

<pallas_src>
import jax
import jax.numpy as jnp
from jax.experimental import pallas as pl
from jax.experimental.pallas import tpu as pltpu

IN_F, IN_PAD = 324, 384      # fc1 input features, padded to 3*128
HID = 128                    # fc1/fc2 output features (already lane-aligned)
OUT_F, OUT_PAD = 108, 128    # fc3 output features, padded to 128

MAX_B_TILE = 512             # rows per grid step (VMEM: x 384K + out 256K + h 128K)


def _round_up(n, m):
    return ((n + m - 1) // m) * m


def _mlp_kernel(x_ref, w1_ref, w2_ref, w3_ref, b_ref, o_ref):
    x = x_ref[...]                                                   # (Bt, 384) bf16

    # fc1 + ReLU  (bf16 MXU inputs, f32 accumulation, f32 elementwise)
    h1 = jnp.dot(x, w1_ref[...], preferred_element_type=jnp.float32) + b_ref[0:1, :]
    h1 = jnp.maximum(h1, 0.0)                                        # (Bt, 128) f32

    # fc2 + ReLU
    h2 = jnp.dot(h1.astype(jnp.bfloat16), w2_ref[...],
                 preferred_element_type=jnp.float32) + b_ref[1:2, :]
    h2 = jnp.maximum(h2, 0.0)                                        # (Bt, 128) f32

    # fc3 + sigmoid (exp + approx reciprocal both land on the EUP slot)
    z = jnp.dot(h2.astype(jnp.bfloat16), w3_ref[...],
                preferred_element_type=jnp.float32) + b_ref[2:3, :]  # (Bt, 128) f32
    o_ref[...] = pl.reciprocal(1.0 + jnp.exp(-z), approx=True)


def pack_params(params):
    """Pad + cast once, outside the hot path.

    params: dict with pre-transposed f32 weights w1 (324,128), w2 (128,128),
    w3 (128,108) and 1-D biases b1 (128,), b2 (128,), b3 (108,).
    """
    w1 = jnp.pad(params["w1"], ((0, IN_PAD - IN_F), (0, 0))).astype(jnp.bfloat16)
    w2 = params["w2"].astype(jnp.bfloat16)
    w3 = jnp.pad(params["w3"], ((0, 0), (0, OUT_PAD - OUT_F))).astype(jnp.bfloat16)
    b = jnp.stack([params["b1"],
                   params["b2"],
                   jnp.pad(params["b3"], (0, OUT_PAD - OUT_F))], axis=0)  # (3,128) f32
    return w1, w2, w3, b


def low_level_dqn_forward(x, packed):
    """x: (B, 324) f32. packed: output of pack_params. Returns (B, 108) f32."""
    w1, w2, w3, b = packed
    B = x.shape[0]

    # Batch tile: multiple of 16 (bf16 sublane packing), up to MAX_B_TILE rows/step.
    b_tile = min(MAX_B_TILE, _round_up(B, 16))
    b_pad = _round_up(B, b_tile)
    grid = (b_pad // b_tile,)

    # Pad batch + feature dim, cast activations to bf16 once outside the kernel.
    x_pad = jnp.pad(x, ((0, b_pad - B), (0, IN_PAD - IN_F))).astype(jnp.bfloat16)

    cost = pl.CostEstimate(
        flops=2 * b_pad * (IN_PAD * HID + HID * HID + HID * OUT_PAD),
        transcendentals=b_pad * OUT_PAD,
        bytes_accessed=(int(w1.size) + int(w2.size) + int(w3.size)) * 2
                       + int(b.size) * 4
                       + b_pad * IN_PAD * 2
                       + b_pad * OUT_PAD * 4,
    )

    out = pl.pallas_call(
        _mlp_kernel,
        out_shape=jax.ShapeDtypeStruct((b_pad, OUT_PAD), jnp.float32),
        grid=grid,
        in_specs=[
            pl.BlockSpec((b_tile, IN_PAD), lambda i: (i, 0)),   # x: tiled over batch
            pl.BlockSpec((IN_PAD, HID), lambda i: (0, 0)),      # w1: VMEM-resident
            pl.BlockSpec((HID, HID), lambda i: (0, 0)),         # w2: VMEM-resident
            pl.BlockSpec((HID, OUT_PAD), lambda i: (0, 0)),     # w3: VMEM-resident
            pl.BlockSpec((3, OUT_PAD), lambda i: (0, 0)),       # packed biases
        ],
        out_specs=pl.BlockSpec((b_tile, OUT_PAD), lambda i: (i, 0)),
        compiler_params=pltpu.CompilerParams(
            dimension_semantics=("parallel",)),                 # megacore on v7x
        cost_estimate=cost,
    )(x_pad, w1, w2, w3, b)

    return out[:B, :OUT_F]


def init_params(key):
    """Deterministic init mimicking nn.Linear's U(-1/sqrt(fan_in), 1/sqrt(fan_in))."""
    dims = [(IN_F, HID), (HID, HID), (HID, OUT_F)]
    params = {}
    keys = jax.random.split(key, 2 * len(dims))
    for i, (fan_in, fan_out) in enumerate(dims):
        bound = 1.0 / jnp.sqrt(jnp.float32(fan_in))
        # stored already transposed: (in, out)
        params[f"w{i+1}"] = jax.random.uniform(
            keys[2 * i], (fan_in, fan_out), jnp.float32, -bound, bound)
        params[f"b{i+1}"] = jax.random.uniform(
            keys[2 * i + 1], (fan_out,), jnp.float32, -bound, bound)
    return params


if __name__ == "__main__":
    key = jax.random.PRNGKey(0)
    k_params, k_x = jax.random.split(key)

    params = init_params(k_params)
    packed = pack_params(params)

    batch = 8
    x = jax.random.normal(k_x, (batch, IN_F), jnp.float32)

    out = low_level_dqn_forward(x, packed)
    out = jax.block_until_ready(out)

    # Reference with the same numerics as the kernel (bf16 MXU inputs, f32 acc)
    def ref(x, p, w_dtype):
        w1 = p["w1"].astype(w_dtype)
        w2 = p["w2"].astype(w_dtype)
        w3 = p["w3"].astype(w_dtype)
        h1 = jnp.maximum(jnp.dot(x.astype(w_dtype), w1,
                                 preferred_element_type=jnp.float32) + p["b1"], 0.0)
        h2 = jnp.maximum(jnp.dot(h1.astype(w_dtype), w2,
                                 preferred_element_type=jnp.float32) + p["b2"], 0.0)
        z = jnp.dot(h2.astype(w_dtype), w3,
                    preferred_element_type=jnp.float32) + p["b3"]
        return jax.nn.sigmoid(z)

    expected_bf16 = ref(x, params, jnp.bfloat16)   # matches kernel numerics
    expected_f32 = ref(x, params, jnp.float32)     # original-module semantics

    assert out.shape == (batch, OUT_F)
    assert jnp.allclose(out, expected_bf16, atol=5e-3), "mismatch vs bf16 reference"
    assert jnp.allclose(out, expected_f32, atol=2e-2), "mismatch vs f32 reference"
    print("KERNEL_OK")
</pallas_src>

<mosaic_0001>
module attributes {stable_mosaic.version = 11 : i64} {
  func.func @_mlp_kernel(%arg0: i32, %arg1: memref<16x384xbf16, #tpu.memory_space<vmem>>, %arg2: memref<384x128xbf16, #tpu.memory_space<vmem>>, %arg3: memref<128x128xbf16, #tpu.memory_space<vmem>>, %arg4: memref<128x128xbf16, #tpu.memory_space<vmem>>, %arg5: memref<3x128xf32, #tpu.memory_space<vmem>>, %arg6: memref<16x128xf32, #tpu.memory_space<vmem>>) attributes {dimension_semantics = [#tpu.dimension_semantics<parallel>], iteration_bounds = array<i64: 1>, scalar_prefetch = 0 : i64, scratch_operands = 0 : i64, tpu.core_type = #tpu.core_type<tc>, window_params = [{transform_indices = @transform_0, window_bounds = array<i64: 16, 384>}, {pipeline_mode = #tpu.pipeline_mode<synchronous>, transform_indices = @transform_1, window_bounds = array<i64: 384, 128>}, {pipeline_mode = #tpu.pipeline_mode<synchronous>, transform_indices = @transform_2, window_bounds = array<i64: 128, 128>}, {pipeline_mode = #tpu.pipeline_mode<synchronous>, transform_indices = @transform_3, window_bounds = array<i64: 128, 128>}, {pipeline_mode = #tpu.pipeline_mode<synchronous>, transform_indices = @transform_4, window_bounds = array<i64: 3, 128>}, {transform_indices = @transform_5, window_bounds = array<i64: 16, 128>}]} {
    %c0 = arith.constant 0 : index
    %c0_0 = arith.constant 0 : index
    %0 = vector.load %arg1[%c0, %c0_0] : memref<16x384xbf16, #tpu.memory_space<vmem>>, vector<16x384xbf16>
    %c0_1 = arith.constant 0 : index
    %c0_2 = arith.constant 0 : index
    %1 = vector.load %arg2[%c0_1, %c0_2] : memref<384x128xbf16, #tpu.memory_space<vmem>>, vector<384x128xbf16>
    %cst = arith.constant dense<0.000000e+00> : vector<16x128xf32>
    %2 = tpu.matmul %0, %1, %cst {dimension_numbers = #tpu.dot_dimension_numbers<[1], [0], [0], [1], [0, 0, 1, 1], [], []>} : vector<16x384xbf16>, vector<384x128xbf16>, vector<16x128xf32> -> vector<16x128xf32>
    %c0_3 = arith.constant 0 : index
    %c0_4 = arith.constant 0 : index
    %3 = vector.load %arg5[%c0_3, %c0_4] : memref<3x128xf32, #tpu.memory_space<vmem>>, vector<1x128xf32>
    %4 = vector.broadcast %3 : vector<1x128xf32> to vector<16x128xf32>
    %5 = arith.addf %2, %4 : vector<16x128xf32>
    %cst_5 = arith.constant 0.000000e+00 : f32
    %6 = vector.broadcast %cst_5 : f32 to vector<16x128xf32>
    %7 = arith.maximumf %5, %6 : vector<16x128xf32>
    %8 = arith.truncf %7 : vector<16x128xf32> to vector<16x128xbf16>
    %c0_6 = arith.constant 0 : index
    %c0_7 = arith.constant 0 : index
    %9 = vector.load %arg3[%c0_6, %c0_7] : memref<128x128xbf16, #tpu.memory_space<vmem>>, vector<128x128xbf16>
    %cst_8 = arith.constant dense<0.000000e+00> : vector<16x128xf32>
    %10 = tpu.matmul %8, %9, %cst_8 {dimension_numbers = #tpu.dot_dimension_numbers<[1], [0], [0], [1], [0, 0, 1, 1], [], []>} : vector<16x128xbf16>, vector<128x128xbf16>, vector<16x128xf32> -> vector<16x128xf32>
    %c1 = arith.constant 1 : index
    %c0_9 = arith.constant 0 : index
    %11 = vector.load %arg5[%c1, %c0_9] : memref<3x128xf32, #tpu.memory_space<vmem>>, vector<1x128xf32>
    %12 = vector.broadcast %11 : vector<1x128xf32> to vector<16x128xf32>
    %13 = arith.addf %10, %12 : vector<16x128xf32>
    %cst_10 = arith.constant 0.000000e+00 : f32
    %14 = vector.broadcast %cst_10 : f32 to vector<16x128xf32>
    %15 = arith.maximumf %13, %14 : vector<16x128xf32>
    %16 = arith.truncf %15 : vector<16x128xf32> to vector<16x128xbf16>
    %c0_11 = arith.constant 0 : index
    %c0_12 = arith.constant 0 : index
    %17 = vector.load %arg4[%c0_11, %c0_12] : memref<128x128xbf16, #tpu.memory_space<vmem>>, vector<128x128xbf16>
    %cst_13 = arith.constant dense<0.000000e+00> : vector<16x128xf32>
    %18 = tpu.matmul %16, %17, %cst_13 {dimension_numbers = #tpu.dot_dimension_numbers<[1], [0], [0], [1], [0, 0, 1, 1], [], []>} : vector<16x128xbf16>, vector<128x128xbf16>, vector<16x128xf32> -> vector<16x128xf32>
    %c2 = arith.constant 2 : index
    %c0_14 = arith.constant 0 : index
    %19 = vector.load %arg5[%c2, %c0_14] : memref<3x128xf32, #tpu.memory_space<vmem>>, vector<1x128xf32>
    %20 = vector.broadcast %19 : vector<1x128xf32> to vector<16x128xf32>
    %21 = arith.addf %18, %20 : vector<16x128xf32>
    %cst_15 = arith.constant 0.000000e+00 : f32
    %22 = vector.broadcast %cst_15 : f32 to vector<16x128xf32>
    %23 = arith.subf %22, %21 : vector<16x128xf32>
    %24 = math.exp %23 : vector<16x128xf32>
    %cst_16 = arith.constant 1.000000e+00 : f32
    %25 = vector.broadcast %cst_16 : f32 to vector<16x128xf32>
    %26 = arith.addf %25, %24 : vector<16x128xf32>
    %27 = tpu.reciprocal %26 {approx = true} : vector<16x128xf32> -> vector<16x128xf32>
    %c0_17 = arith.constant 0 : index
    %c0_18 = arith.constant 0 : index
    %28 = vector.load %arg6[%c0_17, %c0_18] : memref<16x128xf32, #tpu.memory_space<vmem>>, vector<16x128xf32>
    tpu.vector_store %arg6[%c0_17, %c0_18], %27 {strides = array<i32>} : memref<16x128xf32, #tpu.memory_space<vmem>>, vector<16x128xf32>,
    return
  }
  func.func @transform_0(%arg0: i32) -> (i32, i32) {
    %c0_i32 = arith.constant 0 : i32
    %c0_i32_0 = arith.constant 0 : i32
    return %arg0, %c0_i32 : i32, i32
  }
  func.func @transform_1(%arg0: i32) -> (i32, i32) {
    %c0_i32 = arith.constant 0 : i32
    %c0_i32_0 = arith.constant 0 : i32
    %c0_i32_1 = arith.constant 0 : i32
    return %c0_i32, %c0_i32_0 : i32, i32
  }
  func.func @transform_2(%arg0: i32) -> (i32, i32) {
    %c0_i32 = arith.constant 0 : i32
    %c0_i32_0 = arith.constant 0 : i32
    %c0_i32_1 = arith.constant 0 : i32
    return %c0_i32, %c0_i32_0 : i32, i32
  }
  func.func @transform_3(%arg0: i32) -> (i32, i32) {
    %c0_i32 = arith.constant 0 : i32
    %c0_i32_0 = arith.constant 0 : i32
    %c0_i32_1 = arith.constant 0 : i32
    return %c0_i32, %c0_i32_0 : i32, i32
  }
  func.func @transform_4(%arg0: i32) -> (i32, i32) {
    %c0_i32 = arith.constant 0 : i32
    %c0_i32_0 = arith.constant 0 : i32
    %c0_i32_1 = arith.constant 0 : i32
    return %c0_i32, %c0_i32_0 : i32, i32
  }
  func.func @transform_5(%arg0: i32) -> (i32, i32) {
    %c0_i32 = arith.constant 0 : i32
    %c0_i32_0 = arith.constant 0 : i32
    return %arg0, %c0_i32 : i32, i32
  }
}

</mosaic_0001>

<bundles_post_ra>
// kernel: tpu_custom_call.1
= control target key start
LH: loop header
LB: loop body
LE: loop exit
PB: predicated region body
PF: predicated region fallthrough
CT: control target
= control target key end

     0   :  { %10 = vsyncpa [#allocation3], 0  ;;  %s1067_s0 = inlined_call_operand.hbm [shape: bf16[16,384], index: 0, kind: input, shape index: {}]   ;;  %s1068_s1 = inlined_call_operand.hbm [shape: bf16[384,128], index: 1, kind: input, shape index: {}]   ;;  %s1069_s2 = inlined_call_operand.hbm [shape: bf16[128,128], index: 2, kind: input, shape index: {}]   ;;  %s1070_s3 = inlined_call_operand.hbm [shape: bf16[128,128], index: 3, kind: input, shape index: {}]   ;;  %s1071_s4 = inlined_call_operand.vmem [shape: f32[3,128], index: 4, kind: input, shape index: {}]   ;;  %s1072_s5 = inlined_call_operand.hbm [shape: f32[16,128], index: 5, kind: output, shape index: {}]  }
   0x1   :  { %11 = vsyncpa [#allocation6], 0 }
   0x2   :  { %12 = vsyncpa [#allocation9], 0 }
   0x3   :  { %13 = vsyncpa [#allocation4], 0  ;;  %s961_s18 = smov [#allocation5]  }
   0x4   :  { %s31_s19 = sshll.u32 %s961_s18, 4  ;;  %s32_s19 = int_to_ptr.vmem [resolvable:$true] %s31_s19 }
   0x5   :  { %s861_s20 = scalar_lea.vmem %s32_s19, 3072  ;;  %p866_p1 = scmp.lt.s32.totalorder %s32_s19, %s32_s19 }
   0x6   :  { %p862_p0 = scmp.ne.s32.totalorder %s32_s19, %s861_s20  ;;  %p867_p2 = scmp.lt.s32.totalorder %s861_s20, %s861_s20 }
   0x8   :  { %p868_p3 = por %p867_p2, %p866_p1 }
   0xa   :  { %p869_p4 = pnand %p868_p3, %p862_p0 }
   0xc   :  { %872 = shalt.err (!%p869_p4)
}
   0xd   :  { %s962_s21 = smov 64   ;;  %s963_s22 = smov 4  }
   0xe   :  { %37 = dma.hbm_to_vmem [thread:$0]  %s1068_s1, 3072, %s32_s19, [#allocation6], %s962_s21, %s962_s21, %s963_s22  }
   0xf   :  { %s964_s25 = smov [#allocation2]  }
  0x10   :  { %s19_s26 = sshll.u32 %s964_s25, 4  ;;  %s20_s26 = int_to_ptr.vmem [resolvable:$true] %s19_s26 }
  0x11   :  { %s881_s27 = scalar_lea.vmem %s20_s26, 384  ;;  %p886_p6 = scmp.lt.s32.totalorder %s20_s26, %s20_s26 }
  0x12   :  { %p882_p5 = scmp.ne.s32.totalorder %s20_s26, %s881_s27  ;;  %p887_p7 = scmp.lt.s32.totalorder %s881_s27, %s881_s27 }
  0x14   :  { %p888_p8 = por %p887_p7, %p886_p6 }
  0x16   :  { %p889_p9 = pnand %p888_p8, %p882_p5 }
  0x18   :  { %892 = shalt.err (!%p889_p9)
}
  0x19   :  { %s965_s28 = smov 192   ;;  %s966_s29 = smov 12  }
  0x1a   :  { %25 = dma.hbm_to_vmem [thread:$0]  %s1067_s0, 384, %s20_s26, [#allocation3], %s965_s28, %s965_s28, %s966_s29  }
  0x1b   :  { %s967_s7 = smov [#allocation7]   ;;  %s968_s9 = smov [#allocation8]  }
  0x1c   :  { %s43_s8 = sshll.u32 %s967_s7, 4  ;;  %s55_s1 = sshll.u32 %s968_s9, 4  ;;  %s44_s8 = int_to_ptr.vmem [resolvable:$true] %s43_s8  ;;  %s56_s1 = int_to_ptr.vmem [resolvable:$true] %s55_s1 }
  0x1d   :  { %s901_s10 = scalar_lea.vmem %s44_s8, 1024  ;;  %p906_p11 = scmp.lt.s32.totalorder %s44_s8, %s44_s8 }
  0x1e   :  { %p902_p10 = scmp.ne.s32.totalorder %s44_s8, %s901_s10  ;;  %p907_p12 = scmp.lt.s32.totalorder %s901_s10, %s901_s10 }
  0x20   :  { %p908_p13 = por %p907_p12, %p906_p11 }
  0x22   :  { %p909_p0 = pnand %p908_p13, %p902_p10 }
  0x24   :  { %912 = shalt.err (!%p909_p0)
}
  0x25   :  { %49 = dma.hbm_to_vmem [thread:$0]  %s1069_s2, 1024, %s44_s8, [#allocation6], %s962_s21, %s962_s21, %s963_s22  }
  0x26   :  { %s921_s0 = scalar_lea.vmem %s56_s1, 1024  ;;  %p926_p2 = scmp.lt.s32.totalorder %s56_s1, %s56_s1 }
  0x27   :  { %p922_p1 = scmp.ne.s32.totalorder %s56_s1, %s921_s0  ;;  %p927_p3 = scmp.lt.s32.totalorder %s921_s0, %s921_s0 }
  0x29   :  { %p928_p4 = por %p927_p3, %p926_p2 }
  0x2b   :  { %p929_p5 = pnand %p928_p4, %p922_p1 }
  0x2d   :  { %932 = shalt.err (!%p929_p5)
}
  0x2e   :  { %61 = dma.hbm_to_vmem [thread:$0]  %s1070_s3, 1024, %s56_s1, [#allocation9], %s962_s21, %s962_s21, %s963_s22  }
  0x2f   :  { %953 = dma.done.wait [#allocation3], 384  }
  0x30   :  { %954 = vsyncadd [#allocation3], 4294966912 }
  0x31   :  { %955 = dma.done.wait [#allocation6], 4096  }
  0x32   :  { %956 = vsyncadd [#allocation6], 4294963200 }
  0x33   :  { %957 = dma.done.wait [#allocation9], 1024  }
  0x34   :  { %958 = vsyncadd [#allocation9], 4294966272  ;;  %v969_v0 = vmov 0.0   ;;  %vm970_vm0 = vmmov 0   ;;  %v801_v1 = vld [vmem:[#allocation5 + $0x78] sm:$0xff]   ;;  %v804_v4 = vld [vmem:[#allocation5 + $0x70] sm:$0xff]  }
  0x35   :  { %728 = vmatprep.subr.bf16.mxu1 %v969_v0  ;;  %744 = vmatprep.mubr.msk.bf16.mxu1 %vm970_vm0, %v969_v0  ;;  %v802_v2 = vld [vmem:[#allocation5 + $0x38] sm:$0xff]   ;;  %v805_v5 = vld [vmem:[#allocation5 + $0x30] sm:$0xff]   ;;  %v807_v7 = vld [vmem:[#allocation5 + $0x68] sm:$0xff]  }
  0x36   :  { %679 = vmatprep.subr.bf16.mxu0 %v801_v1  ;;  %v803_v3 = vld [vmem:[#allocation5 + $0xb8] sm:$0xff]   ;;  %v806_v6 = vld [vmem:[#allocation5 + $0xb0] sm:$0xff]   ;;  %v808_v8 = vld [vmem:[#allocation5 + $0x28] sm:$0xff]  }
  0x37   :  { %680 = vmatpush3.bf16.msra.mxu0 %v802_v2  ;;  %729 = vmatpush3.bf16.msra.mxu1 %v803_v3  ;;  %v809_v9 = vld [vmem:[#allocation5 + $0xa8] sm:$0xff]   ;;  %v810_v10 = vld [vmem:[#allocation5 + $0x60] sm:$0xff]   ;;  %v813_v13 = vld [vmem:[#allocation5 + $0x58] sm:$0xff]  }
  0x38   :  { %681 = vmatprep.subr.bf16.mxu0 %v804_v4  ;;  %730 = vmatprep.subr.bf16.mxu1 %v969_v0  ;;  %v811_v11 = vld [vmem:[#allocation5 + $0x20] sm:$0xff]   ;;  %v814_v14 = vld [vmem:[#allocation5 + $0x18] sm:$0xff]   ;;  %v816_v16 = vld [vmem:[#allocation5 + $0x50] sm:$0xff]  }
  0x39   :  { %v812_v12 = vld [vmem:[#allocation5 + $0xa0] sm:$0xff]   ;;  %v815_v15 = vld [vmem:[#allocation5 + $0x98] sm:$0xff]   ;;  %v817_v17 = vld [vmem:[#allocation5 + $0x10] sm:$0xff]  }
  0x3a   :  { %v818_v18 = vld [vmem:[#allocation5 + $0x90] sm:$0xff]   ;;  %v819_v19 = vld [vmem:[#allocation5 + $0x48] sm:$0xff]   ;;  %v822_v22 = vld [vmem:[#allocation5 + $0x40] sm:$0xff]  }
  0x3b   :  { %682 = vmatpush3.bf16.msra.mxu0 %v805_v5  ;;  %731 = vmatpush3.bf16.msra.mxu1 %v806_v6  ;;  %v820_v20 = vld [vmem:[#allocation5 + $0x8] sm:$0xff]   ;;  %v823_v24 = vld [vmem:[#allocation5] sm:$0xff]   ;;  %v828_v27 = vld [vmem:[#allocation2 + $0x8] ss:$12 sps:$4 sm:$0xff]  }
  0x3c   :  { %683 = vmatprep.subr.bf16.mxu0 %v807_v7  ;;  %732 = vmatprep.subr.bf16.mxu1 %v969_v0  ;;  %v821_v21 = vld [vmem:[#allocation5 + $0x88] sm:$0xff]   ;;  %v824_v25 = vld [vmem:[#allocation5 + $0x80] sm:$0xff]   ;;  %v829_v28 = vld [vmem:[#allocation7 + $0x38] sm:$0xff]  }
  0x3d   :  { %v827_v23 = vld [vmem:[#allocation2 + $0x4] ss:$12 sps:$4 sm:$0xff]   ;;  %v825_v26 = vld [vmem:[#allocation2] ss:$12 sps:$4 sm:$0xff]   ;;  %v832_v31 = vld [vmem:[#allocation7 + $0x20] sm:$0xff]  }
  0x3e   :  { %326 = vmatprep.mubr.bf16.mxu0 %v827_v23  ;;  %v830_v29 = vld [vmem:[#allocation7 + $0x30] sm:$0xff]   ;;  %v831_v30 = vld [vmem:[#allocation7 + $0x28] sm:$0xff]   ;;  %v833_v32 = vld [vmem:[#allocation7 + $0x18] sm:$0xff]  }
  0x3f   :  { %684 = vmatpush3.bf16.msra.mxu0 %v808_v8  ;;  %733 = vmatpush3.bf16.msra.mxu1 %v809_v9  ;;  %v834_v33 = vld [vmem:[#allocation7 + $0x10] sm:$0xff]   ;;  %v835_v34 = vld [vmem:[#allocation7 + $0x8] sm:$0xff]   ;;  %v836_v35 = vld [vmem:[#allocation7] sm:$0xff]  }
  0x40   :  { %685 = vmatprep.subr.bf16.mxu0 %v810_v10  ;;  %734 = vmatprep.subr.bf16.mxu1 %v969_v0  ;;  %v837_v36 = vld [vmem:[#allocation8 + $0x38] sm:$0xff]   ;;  %v838_v37 = vld [vmem:[#allocation8 + $0x30] sm:$0xff]   ;;  %v839_v38 = vld [vmem:[#allocation8 + $0x28] sm:$0xff]  }
  0x41   :  { %v840_v39 = vld [vmem:[#allocation8 + $0x20] sm:$0xff]   ;;  %v841_v40 = vld [vmem:[#allocation8 + $0x18] sm:$0xff]   ;;  %v633_v43 = vld [vmem:[%s1071_s4] ss:$0 sm:$0xff] }
  0x42   :  { %v842_v59 = vld [vmem:[#allocation8 + $0x10] sm:$0xff]   ;;  %v843_v60 = vld [vmem:[#allocation8 + $0x8] sm:$0xff]   ;;  %v844_v61 = vld [vmem:[#allocation8] sm:$0xff]  }
  0x43   :  { %686 = vmatpush3.bf16.msra.mxu0 %v811_v11  ;;  %735 = vmatpush3.bf16.msra.mxu1 %v812_v12  ;;  %v661_v62 = vld [vmem:[%s1071_s4 + $0x1] ss:$0 sm:$0xff] }
  0x44   :  { %687 = vmatprep.subr.bf16.mxu0 %v813_v13  ;;  %736 = vmatprep.subr.bf16.mxu1 %v969_v0 }
  0x47   :  { %688 = vmatpush3.bf16.msra.mxu0 %v814_v14  ;;  %737 = vmatpush3.bf16.msra.mxu1 %v815_v15 }
  0x48   :  { %689 = vmatprep.subr.bf16.mxu0 %v816_v16  ;;  %738 = vmatprep.subr.bf16.mxu1 %v969_v0 }
  0x4b   :  { %690 = vmatpush3.bf16.msra.mxu0 %v817_v17  ;;  %739 = vmatpush3.bf16.msra.mxu1 %v818_v18 }
  0x4c   :  { %691 = vmatprep.subr.bf16.mxu0 %v819_v19  ;;  %740 = vmatprep.subr.bf16.mxu1 %v969_v0 }
  0x4f   :  { %692 = vmatpush3.bf16.msra.mxu0 %v820_v20  ;;  %741 = vmatpush3.bf16.msra.mxu1 %v821_v21 }
  0x50   :  { %693 = vmatprep.subr.bf16.mxu0 %v822_v22  ;;  %742 = vmatprep.subr.bf16.mxu1 %v969_v0 }
  0x53   :  { %694 = vmatpush3.bf16.msra.mxu0 %v823_v24  ;;  %743 = vmatpush3.bf16.msra.mxu1 %v824_v25 }
  0x54   :  { %748 = vmatprep.subr.bf16.mxu0 %v969_v0  ;;  %768 = vmatprep.subr.bf16.mxu1 %v969_v0 }
  0x56   :  { %327 = vmatmul.mubr.bf16.vlgmr.msra.gmra.mxu0 %v825_v26  ;;  %745 = vmatmul.mubr.bf16.vlgmr.msra.gmra.mxu1 %v828_v27 }
  0x57   :  { %749 = vmatpush3.bf16.msra.mxu0 %v829_v28  ;;  %764 = vmatprep.mubr.msk.bf16.mxu0 %vm970_vm0, %v969_v0 }
  0x58   :  { %750 = vmatprep.subr.bf16.mxu0 %v969_v0  ;;  %784 = vmatprep.mubr.msk.bf16.mxu1 %vm970_vm0, %v969_v0 }
  0x59   :  { %769 = vmatpush3.bf16.msra.mxu1 %v837_v36 }
  0x5a   :  { %770 = vmatprep.subr.bf16.mxu1 %v969_v0 }
  0x5b   :  { %751 = vmatpush3.bf16.msra.mxu0 %v830_v29 }
  0x5c   :  { %752 = vmatprep.subr.bf16.mxu0 %v969_v0 }
  0x5d   :  { %771 = vmatpush3.bf16.msra.mxu1 %v838_v37 }
  0x5e   :  { %772 = vmatprep.subr.bf16.mxu1 %v969_v0 }
  0x5f   :  { %753 = vmatpush3.bf16.msra.mxu0 %v831_v30 }
  0x60   :  { %754 = vmatprep.subr.bf16.mxu0 %v969_v0 }
  0x61   :  { %773 = vmatpush3.bf16.msra.mxu1 %v839_v38 }
  0x62   :  { %774 = vmatprep.subr.bf16.mxu1 %v969_v0 }
  0x63   :  { %755 = vmatpush3.bf16.msra.mxu0 %v832_v31 }
  0x64   :  { %756 = vmatprep.subr.bf16.mxu0 %v969_v0 }
  0x65   :  { %775 = vmatpush3.bf16.msra.mxu1 %v840_v39 }
  0x66   :  { %776 = vmatprep.subr.bf16.mxu1 %v969_v0 }
  0x67   :  { %757 = vmatpush3.bf16.msra.mxu0 %v833_v32 }
  0x68   :  { %758 = vmatprep.subr.bf16.mxu0 %v969_v0 }
  0x69   :  { %777 = vmatpush3.bf16.msra.mxu1 %v841_v40 }
  0x6a   :  { %778 = vmatprep.subr.bf16.mxu1 %v969_v0 }
  0x6b   :  { %759 = vmatpush3.bf16.msra.mxu0 %v834_v33 }
  0x6c   :  { %760 = vmatprep.subr.bf16.mxu0 %v969_v0 }
  0x6d   :  { %779 = vmatpush3.bf16.msra.mxu1 %v842_v59 }
  0x6e   :  { %780 = vmatprep.subr.bf16.mxu1 %v969_v0 }
  0x6f   :  { %761 = vmatpush3.bf16.msra.mxu0 %v835_v34 }
  0x70   :  { %762 = vmatprep.subr.bf16.mxu0 %v969_v0 }
  0x71   :  { %781 = vmatpush3.bf16.msra.mxu1 %v843_v60 }
  0x72   :  { %782 = vmatprep.subr.bf16.mxu1 %v969_v0  ;;  %v670_v0 = vld [vmem:[%s1071_s4 + $0x2] ss:$0 sm:$0xff]  ;;  %s971_s4 = smov [#allocation10]  }
  0x73   :  { %763 = vmatpush3.bf16.msra.mxu0 %v836_v35  ;;  %s619_s19 = sshll.u32 %s971_s4, 4  ;;  %s620_s19 = int_to_ptr.vmem [resolvable:$true] %s619_s19 }
  0x74   :  { %s933_s20 = scalar_lea.vmem %s620_s19, 256  ;;  %p938_p7 = scmp.lt.s32.totalorder %s620_s19, %s620_s19 }
  0x75   :  { %783 = vmatpush3.bf16.msra.mxu1 %v844_v61  ;;  %p934_p6 = scmp.ne.s32.totalorder %s620_s19, %s933_s20  ;;  %p939_p8 = scmp.lt.s32.totalorder %s933_s20, %s933_s20 }
  0x77   :  { %p940_p9 = por %p939_p8, %p938_p7 }
  0x79   :  { %p941_p10 = pnand %p940_p9, %p934_p6 }
 0x116   :  { %v695_v41 = vpop.f32.mrf.mxu0  ;;  %v369_v42 = vpop.f32.mrf.mxu1 }
 0x118   :  { %v696_v44 = vpop.f32.mrf.mxu0  ;;  %v746_v46 = vpop.f32.mrf.mxu1 }
 0x119   :  { %v697_v45 = vadd.f32 %v696_v44, %v695_v41 }
 0x11a   :  { %v698_v47 = vpop.f32.mrf.mxu0  ;;  %v372_v49 = vpop.f32.mrf.mxu1 }
 0x11b   :  { %v329_v48 = vadd.f32 %v697_v45, %v633_v43 }
 0x11c   :  { %v699_v50 = vpop.f32.mrf.mxu0  ;;  %v747_v52 = vpop.f32.mrf.mxu1 }
 0x11d   :  { %v700_v51 = vadd.f32 %v699_v50, %v698_v47  ;;  %v370_v53 = vadd.f32 %v369_v42, %v329_v48 }
 0x11f   :  { %v332_v54 = vadd.f32 %v700_v51, %v633_v43  ;;  %v376_v56 = vmax.f32 %v370_v53, 0.0 }
 0x121   :  { %v373_v55 = vadd.f32 %v372_v49, %v332_v54 }
 0x123   :  { %v377_v57 = vmax.f32 %v373_v55, 0.0 }
 0x125   :  { %v378_v58 = vpack.c.bf16 %v377_v57, %v376_v56 }
 0x127   :  { %765 = vmatmul.mubr.bf16.vlgmr.msra.gmra.mxu0 %v378_v58 }
 0x1e7   :  { %v482_v63 = vpop.f32.mrf.mxu0 }
 0x1e8   :  { %v483_v2 = vadd.f32 %v661_v62, %v482_v63 }
 0x1e9   :  { %v766_v1 = vpop.f32.mrf.mxu0 }
 0x1ea   :  { %v489_v6 = vmax.f32 %v483_v2, 0.0 }
 0x1eb   :  { %v485_v3 = vpop.f32.mrf.mxu0 }
 0x1ec   :  { %v486_v4 = vadd.f32 %v661_v62, %v485_v3 }
 0x1ed   :  { %v767_v5 = vpop.f32.mrf.mxu0 }
 0x1ee   :  { %v490_v7 = vmax.f32 %v486_v4, 0.0 }
 0x1f0   :  { %v491_v8 = vpack.c.bf16 %v490_v7, %v489_v6 }
 0x1f2   :  { %785 = vmatmul.mubr.bf16.vlgmr.msra.gmra.mxu1 %v491_v8 }
 0x2b2   :  { %v595_v9 = vpop.f32.mrf.mxu1 }
 0x2b3   :  { %v596_v10 = vadd.f32 %v670_v0, %v595_v9 }
 0x2b4   :  { %v786_v11 = vpop.f32.mrf.mxu1 }
 0x2b5   :  { %v602_v12 = vsub.f32 0.0, %v596_v10 }
 0x2b6   :  { %v598_v13 = vpop.f32.mrf.mxu1 }
 0x2b7   :  { %v604_v14 = vmul.f32 1.442695, %v602_v12  ;;  %v599_v15 = vadd.f32 %v670_v0, %v598_v13 }
 0x2b8   :  { %v787_v16 = vpop.f32.mrf.mxu1 }
 0x2b9   :  { %845 = vpow2.f32 %v604_v14  ;;  %v603_v17 = vsub.f32 0.0, %v599_v15 }
 0x2bb   :  { %v606_v18 = vmul.f32 1.442695, %v603_v17 }
 0x2bd   :  { %847 = vpow2.f32 %v606_v18 }
 0x2c6   :  { %v846_v19 = vpop.eup %845 }
 0x2c7   :  { %v608_v20 = vadd.f32 1.0, %v846_v19 }
 0x2c9   :  { %849 = vrcp.f32 %v608_v20 }
 0x2ca   :  { %v848_v21 = vpop.eup %847 }
 0x2cb   :  { %v609_v22 = vadd.f32 1.0, %v848_v21 }
 0x2cd   :  { %851 = vrcp.f32 %v609_v22 }
 0x2d6   :  { %v850_v23 = vpop.eup %849 }
 0x2d7   :  { %612 = vst [vmem:[#allocation10] sm:$0xff] %v850_v23 }
 0x2da   :  { %v852_v24 = vpop.eup %851 }
 0x2db   :  { %613 = vst [vmem:[#allocation10 + $0x8] sm:$0xff] %v852_v24 }
 0x2dc   :  { %944 = shalt.err (!%p941_p10)
}
 0x2dd   :  { %s972_s21 = smov 128   ;;  %s973_s22 = smov 8  }
 0x2de   :  { %625 = dma.vmem_to_hbm [thread:$0]  %s620_s19, 256, %s1072_s5, [#allocation4], %s972_s21, %s972_s21, %s973_s22  }
 0x2df   :  { %959 = dma.done.wait [#allocation4], 256  }
 0x2e0   :  { %960 = vsyncadd [#allocation4], 4294967040 }
 0x2e1   :  { %629 = vsyncpa [#allocation3], 1 }
 0x2e2   :  { %630 = vsyncpa [#allocation6], 1 }
 0x2e3   :  { %631 = vsyncpa [#allocation9], 1 }
 0x2e4   :  { %632 = vsyncpa [#allocation4], 1 }

</bundles_post_ra>
